<compile_context>
chip_gen: v6e
topology: v6e:2x2x1
jax: 0.10.0
libtpu: 0.0.40
codegen_flags: <defaults>
</compile_context>

<pallas_src>
from functools import partial

import jax
import jax.numpy as jnp
from jax import lax
from jax.experimental import pallas as pl
from jax.experimental.pallas import tpu as pltpu


def _conv1to3_kernel(w_ref, b_ref, x_ref, o_ref, *, H, W):
    """3x3, stride-1, pad-1 conv from 1 -> 3 channels on flattened images.

    w_ref: SMEM (27,)              -- conv weight (3 out, 1 in, 3, 3) flattened
    b_ref: SMEM (3,)               -- conv bias
    x_ref: VMEM (B_TILE, H*W)      -- flattened gray images (lane-dense)
    o_ref: VMEM (B_TILE, 3*H*W)    -- flattened conv output (lane-dense)
    """
    HW = H * W
    x = x_ref[...]                                     # (B_TILE, HW) f32

    # Hoist all scalar parameter reads out of the unrolled MAC chain.
    wv = [w_ref[t] for t in range(27)]
    bv = [b_ref[c] for c in range(3)]

    # Per-lane row / column indices for the zero-pad boundary masks.
    p = lax.broadcasted_iota(jnp.int32, x.shape, dimension=1)
    if (W & (W - 1)) == 0:                 # power-of-two W: shift/AND, no int div
        row = p >> (W.bit_length() - 1)
        col = p & (W - 1)
    else:
        row = p // W
        col = p - row * W

    # Column validity masks (shared across all dh): 2 compares total.
    col_ok = {-1: col >= 1, 1: col < (W - 1)}

    # Row-shifted copies, pre-masked once (2 compares + 2 selects total).
    # After a +/-1 lane roll the row mask stays correct wherever the column
    # mask is valid, so no AND of row/col masks is needed.
    row_vars = []
    for dh in (-1, 0, 1):
        if dh == 0:
            r = x
        else:
            r = pltpu.roll(x, shift=(-dh * W) % HW, axis=1)
            rmask = (row >= 1) if dh < 0 else (row < (H - 1))
            r = jnp.where(rmask, r, 0.0)
        row_vars.append(r)

    # Tap-outer / channel-inner: one live window at a time, 3 accumulators.
    acc = [jnp.full(x.shape, bv[c], dtype=jnp.float32) for c in range(3)]
    t = 0
    for r in row_vars:                      # dh = -1, 0, +1
        for dw in (-1, 0, 1):
            if dw == 0:
                win = r
            else:
                win = pltpu.roll(r, shift=(-dw) % HW, axis=1)
                win = jnp.where(col_ok[dw], win, 0.0)
            for c in range(3):
                acc[c] = acc[c] + wv[c * 9 + t] * win
            t += 1

    # Lane-dense stores: the output block's last dim is 3*HW (full array dim),
    # and each channel slice starts at a multiple of HW, so these are plain
    # full-width vector stores.
    for c in range(3):
        o_ref[:, c * HW:(c + 1) * HW] = acc[c].astype(o_ref.dtype)


def gray_wrapper_forward(x_nchw, weight, bias):
    """x_nchw: (N, 1, H, W) float32; weight: (3, 1, 3, 3); bias: (3,)."""
    N, C, H, W = x_nchw.shape
    assert C == 1, "GrayWrapperModel expects a single (gray) input channel"
    HW = H * W

    # Lane-dense flattening (metadata-only reshape; no zero-pad pass in HBM).
    x_flat = x_nchw.reshape(N, HW).astype(jnp.float32)
    w_flat = weight.reshape(-1).astype(jnp.float32)    # (27,)
    b = bias.astype(jnp.float32)                       # (3,)

    # Batch tile: target ~256K f32 input elems per step (~1 MiB in, ~3 MiB out,
    # <=8 MiB double-buffered -> fits v7x's 64 MiB VMEM with large margin) while
    # amortizing the ~0.35 us per-grid-step overhead.  Keep the sublane block
    # dim a multiple of 8 (or == N for small / odd batches).
    target_elems = 256 * 1024
    if N % 8 == 0:
        b_tile = min(N, max(8, (target_elems // HW) // 8 * 8))
        if b_tile == N and N >= 16:
            # Keep >= 2 grid steps so the "parallel" axis can shard across the
            # two v7x TensorCores.
            b_tile = max(8, (N // 2) // 8 * 8)
    else:
        b_tile = N
    grid = (pl.cdiv(N, b_tile),)

    in_block_bytes = b_tile * HW * 4
    out_block_bytes = b_tile * 3 * HW * 4
    vmem_limit = int(min(100 << 20, max(32 << 20,
                                        3 * (in_block_bytes + out_block_bytes))))

    cost = pl.CostEstimate(
        flops=54 * N * HW,                 # 9 taps x 3 channels x (mul+add)
        transcendentals=0,
        bytes_accessed=16 * N * HW,        # 4 B/px read + 12 B/px written
    )

    conv_out = pl.pallas_call(
        partial(_conv1to3_kernel, H=H, W=W),
        out_shape=jax.ShapeDtypeStruct((N, 3 * HW), jnp.float32),
        grid=grid,
        in_specs=[
            pl.BlockSpec(memory_space=pltpu.SMEM),             # weights (27,)
            pl.BlockSpec(memory_space=pltpu.SMEM),             # bias (3,)
            pl.BlockSpec((b_tile, HW), lambda n: (n, 0)),      # images
        ],
        out_specs=pl.BlockSpec((b_tile, 3 * HW), lambda n: (n, 0)),
        compiler_params=pltpu.CompilerParams(
            dimension_semantics=("parallel",),
            vmem_limit_bytes=vmem_limit),
        cost_estimate=cost,
    )(w_flat, b, x_flat)

    # raw_model(x) — identity (see TODO at top of file).
    return conv_out.reshape(N, 3, H, W)


def _reference_conv(x_nchw, weight, bias):
    """Plain-JAX reference (lax conv) for correctness checking."""
    out = jax.lax.conv_general_dilated(
        x_nchw, weight, window_strides=(1, 1), padding=((1, 1), (1, 1)),
        dimension_numbers=("NCHW", "OIHW", "NCHW"))
    return out + bias.reshape(1, -1, 1, 1)


if __name__ == "__main__":
    key = jax.random.PRNGKey(0)
    k_x, k_w, k_b = jax.random.split(key, 3)

    # Small shapes consistent with the module: batch=2, gray channel, 16x16.
    N, H, W = 2, 16, 16
    x = jax.random.normal(k_x, (N, 1, H, W), dtype=jnp.float32)

    # Deterministic parameter init (PyTorch-style uniform bound 1/sqrt(fan_in)).
    fan_in = 1 * 3 * 3
    bound = 1.0 / (fan_in ** 0.5)
    weight = jax.random.uniform(k_w, (3, 1, 3, 3), jnp.float32, -bound, bound)
    bias = jax.random.uniform(k_b, (3,), jnp.float32, -bound, bound)

    out = gray_wrapper_forward(x, weight, bias)
    out = jax.block_until_ready(out)

    ref = _reference_conv(x, weight, bias)
    assert out.shape == (N, 3, H, W)
    assert jnp.allclose(out, ref, atol=1e-5, rtol=1e-5), "mismatch vs reference"

    print("KERNEL_OK")
</pallas_src>

<mosaic_0001>
module attributes {stable_mosaic.version = 11 : i64} {
  func.func @_conv1to3_kernel(%arg0: i32, %arg1: memref<27xf32, #tpu.memory_space<smem>>, %arg2: memref<3xf32, #tpu.memory_space<smem>>, %arg3: memref<2x256xf32, #tpu.memory_space<vmem>>, %arg4: memref<2x768xf32, #tpu.memory_space<vmem>>) attributes {dimension_semantics = [#tpu.dimension_semantics<parallel>], iteration_bounds = array<i64: 1>, scalar_prefetch = 0 : i64, scratch_operands = 0 : i64, tpu.core_type = #tpu.core_type<tc>, window_params = [{transform_indices = @transform_0, window_bounds = array<i64: 27>}, {transform_indices = @transform_1, window_bounds = array<i64: 3>}, {transform_indices = @transform_2, window_bounds = array<i64: 2, 256>}, {transform_indices = @transform_3, window_bounds = array<i64: 2, 768>}]} {
    %c0 = arith.constant 0 : index
    %c0_0 = arith.constant 0 : index
    %0 = vector.load %arg3[%c0, %c0_0] : memref<2x256xf32, #tpu.memory_space<vmem>>, vector<2x256xf32>
    %c0_1 = arith.constant 0 : index
    %1 = memref.load %arg1[%c0_1] : memref<27xf32, #tpu.memory_space<smem>>
    %c1 = arith.constant 1 : index
    %2 = memref.load %arg1[%c1] : memref<27xf32, #tpu.memory_space<smem>>
    %c2 = arith.constant 2 : index
    %3 = memref.load %arg1[%c2] : memref<27xf32, #tpu.memory_space<smem>>
    %c3 = arith.constant 3 : index
    %4 = memref.load %arg1[%c3] : memref<27xf32, #tpu.memory_space<smem>>
    %c4 = arith.constant 4 : index
    %5 = memref.load %arg1[%c4] : memref<27xf32, #tpu.memory_space<smem>>
    %c5 = arith.constant 5 : index
    %6 = memref.load %arg1[%c5] : memref<27xf32, #tpu.memory_space<smem>>
    %c6 = arith.constant 6 : index
    %7 = memref.load %arg1[%c6] : memref<27xf32, #tpu.memory_space<smem>>
    %c7 = arith.constant 7 : index
    %8 = memref.load %arg1[%c7] : memref<27xf32, #tpu.memory_space<smem>>
    %c8 = arith.constant 8 : index
    %9 = memref.load %arg1[%c8] : memref<27xf32, #tpu.memory_space<smem>>
    %c9 = arith.constant 9 : index
    %10 = memref.load %arg1[%c9] : memref<27xf32, #tpu.memory_space<smem>>
    %c10 = arith.constant 10 : index
    %11 = memref.load %arg1[%c10] : memref<27xf32, #tpu.memory_space<smem>>
    %c11 = arith.constant 11 : index
    %12 = memref.load %arg1[%c11] : memref<27xf32, #tpu.memory_space<smem>>
    %c12 = arith.constant 12 : index
    %13 = memref.load %arg1[%c12] : memref<27xf32, #tpu.memory_space<smem>>
    %c13 = arith.constant 13 : index
    %14 = memref.load %arg1[%c13] : memref<27xf32, #tpu.memory_space<smem>>
    %c14 = arith.constant 14 : index
    %15 = memref.load %arg1[%c14] : memref<27xf32, #tpu.memory_space<smem>>
    %c15 = arith.constant 15 : index
    %16 = memref.load %arg1[%c15] : memref<27xf32, #tpu.memory_space<smem>>
    %c16 = arith.constant 16 : index
    %17 = memref.load %arg1[%c16] : memref<27xf32, #tpu.memory_space<smem>>
    %c17 = arith.constant 17 : index
    %18 = memref.load %arg1[%c17] : memref<27xf32, #tpu.memory_space<smem>>
    %c18 = arith.constant 18 : index
    %19 = memref.load %arg1[%c18] : memref<27xf32, #tpu.memory_space<smem>>
    %c19 = arith.constant 19 : index
    %20 = memref.load %arg1[%c19] : memref<27xf32, #tpu.memory_space<smem>>
    %c20 = arith.constant 20 : index
    %21 = memref.load %arg1[%c20] : memref<27xf32, #tpu.memory_space<smem>>
    %c21 = arith.constant 21 : index
    %22 = memref.load %arg1[%c21] : memref<27xf32, #tpu.memory_space<smem>>
    %c22 = arith.constant 22 : index
    %23 = memref.load %arg1[%c22] : memref<27xf32, #tpu.memory_space<smem>>
    %c23 = arith.constant 23 : index
    %24 = memref.load %arg1[%c23] : memref<27xf32, #tpu.memory_space<smem>>
    %c24 = arith.constant 24 : index
    %25 = memref.load %arg1[%c24] : memref<27xf32, #tpu.memory_space<smem>>
    %c25 = arith.constant 25 : index
    %26 = memref.load %arg1[%c25] : memref<27xf32, #tpu.memory_space<smem>>
    %c26 = arith.constant 26 : index
    %27 = memref.load %arg1[%c26] : memref<27xf32, #tpu.memory_space<smem>>
    %c0_2 = arith.constant 0 : index
    %28 = memref.load %arg2[%c0_2] : memref<3xf32, #tpu.memory_space<smem>>
    %c1_3 = arith.constant 1 : index
    %29 = memref.load %arg2[%c1_3] : memref<3xf32, #tpu.memory_space<smem>>
    %c2_4 = arith.constant 2 : index
    %30 = memref.load %arg2[%c2_4] : memref<3xf32, #tpu.memory_space<smem>>
    %31 = tpu.iota {dimensions = array<i32: 1>} : vector<2x256xi32>
    %c4_i32 = arith.constant 4 : i32
    %32 = vector.broadcast %c4_i32 : i32 to vector<2x256xi32>
    %33 = arith.shrsi %31, %32 : vector<2x256xi32>
    %c15_i32 = arith.constant 15 : i32
    %34 = vector.broadcast %c15_i32 : i32 to vector<2x256xi32>
    %35 = arith.andi %31, %34 : vector<2x256xi32>
    %c1_i32 = arith.constant 1 : i32
    %36 = vector.broadcast %c1_i32 : i32 to vector<2x256xi32>
    %37 = arith.cmpi sge, %35, %36 : vector<2x256xi32>
    %c15_i32_5 = arith.constant 15 : i32
    %38 = vector.broadcast %c15_i32_5 : i32 to vector<2x256xi32>
    %39 = arith.cmpi slt, %35, %38 : vector<2x256xi32>
    %c16_i32 = arith.constant 16 : i32
    %40 = tpu.dynamic_rotate %0 by %c16_i32 dim 1 : vector<2x256xf32>, i32 -> vector<2x256xf32>
    %c1_i32_6 = arith.constant 1 : i32
    %41 = vector.broadcast %c1_i32_6 : i32 to vector<2x256xi32>
    %42 = arith.cmpi sge, %33, %41 : vector<2x256xi32>
    %cst = arith.constant 0.000000e+00 : f32
    %43 = vector.broadcast %cst : f32 to vector<2x256xf32>
    %44 = arith.select %42, %40, %43 : vector<2x256xi1>, vector<2x256xf32>
    %c240_i32 = arith.constant 240 : i32
    %45 = tpu.dynamic_rotate %0 by %c240_i32 dim 1 : vector<2x256xf32>, i32 -> vector<2x256xf32>
    %c15_i32_7 = arith.constant 15 : i32
    %46 = vector.broadcast %c15_i32_7 : i32 to vector<2x256xi32>
    %47 = arith.cmpi slt, %33, %46 : vector<2x256xi32>
    %cst_8 = arith.constant 0.000000e+00 : f32
    %48 = vector.broadcast %cst_8 : f32 to vector<2x256xf32>
    %49 = arith.select %47, %45, %48 : vector<2x256xi1>, vector<2x256xf32>
    %50 = vector.broadcast %28 : f32 to vector<2x256xf32>
    %51 = vector.broadcast %29 : f32 to vector<2x256xf32>
    %52 = vector.broadcast %30 : f32 to vector<2x256xf32>
    %c1_i32_9 = arith.constant 1 : i32
    %53 = tpu.dynamic_rotate %44 by %c1_i32_9 dim 1 : vector<2x256xf32>, i32 -> vector<2x256xf32>
    %cst_10 = arith.constant 0.000000e+00 : f32
    %54 = vector.broadcast %cst_10 : f32 to vector<2x256xf32>
    %55 = arith.select %37, %53, %54 : vector<2x256xi1>, vector<2x256xf32>
    %56 = vector.broadcast %1 : f32 to vector<2x256xf32>
    %57 = arith.mulf %56, %55 : vector<2x256xf32>
    %58 = arith.addf %50, %57 : vector<2x256xf32>
    %59 = vector.broadcast %10 : f32 to vector<2x256xf32>
    %60 = arith.mulf %59, %55 : vector<2x256xf32>
    %61 = arith.addf %51, %60 : vector<2x256xf32>
    %62 = vector.broadcast %19 : f32 to vector<2x256xf32>
    %63 = arith.mulf %62, %55 : vector<2x256xf32>
    %64 = arith.addf %52, %63 : vector<2x256xf32>
    %65 = vector.broadcast %2 : f32 to vector<2x256xf32>
    %66 = arith.mulf %65, %44 : vector<2x256xf32>
    %67 = arith.addf %58, %66 : vector<2x256xf32>
    %68 = vector.broadcast %11 : f32 to vector<2x256xf32>
    %69 = arith.mulf %68, %44 : vector<2x256xf32>
    %70 = arith.addf %61, %69 : vector<2x256xf32>
    %71 = vector.broadcast %20 : f32 to vector<2x256xf32>
    %72 = arith.mulf %71, %44 : vector<2x256xf32>
    %73 = arith.addf %64, %72 : vector<2x256xf32>
    %c255_i32 = arith.constant 255 : i32
    %74 = tpu.dynamic_rotate %44 by %c255_i32 dim 1 : vector<2x256xf32>, i32 -> vector<2x256xf32>
    %cst_11 = arith.constant 0.000000e+00 : f32
    %75 = vector.broadcast %cst_11 : f32 to vector<2x256xf32>
    %76 = arith.select %39, %74, %75 : vector<2x256xi1>, vector<2x256xf32>
    %77 = vector.broadcast %3 : f32 to vector<2x256xf32>
    %78 = arith.mulf %77, %76 : vector<2x256xf32>
    %79 = arith.addf %67, %78 : vector<2x256xf32>
    %80 = vector.broadcast %12 : f32 to vector<2x256xf32>
    %81 = arith.mulf %80, %76 : vector<2x256xf32>
    %82 = arith.addf %70, %81 : vector<2x256xf32>
    %83 = vector.broadcast %21 : f32 to vector<2x256xf32>
    %84 = arith.mulf %83, %76 : vector<2x256xf32>
    %85 = arith.addf %73, %84 : vector<2x256xf32>
    %c1_i32_12 = arith.constant 1 : i32
    %86 = tpu.dynamic_rotate %0 by %c1_i32_12 dim 1 : vector<2x256xf32>, i32 -> vector<2x256xf32>
    %cst_13 = arith.constant 0.000000e+00 : f32
    %87 = vector.broadcast %cst_13 : f32 to vector<2x256xf32>
    %88 = arith.select %37, %86, %87 : vector<2x256xi1>, vector<2x256xf32>
    %89 = vector.broadcast %4 : f32 to vector<2x256xf32>
    %90 = arith.mulf %89, %88 : vector<2x256xf32>
    %91 = arith.addf %79, %90 : vector<2x256xf32>
    %92 = vector.broadcast %13 : f32 to vector<2x256xf32>
    %93 = arith.mulf %92, %88 : vector<2x256xf32>
    %94 = arith.addf %82, %93 : vector<2x256xf32>
    %95 = vector.broadcast %22 : f32 to vector<2x256xf32>
    %96 = arith.mulf %95, %88 : vector<2x256xf32>
    %97 = arith.addf %85, %96 : vector<2x256xf32>
    %98 = vector.broadcast %5 : f32 to vector<2x256xf32>
    %99 = arith.mulf %98, %0 : vector<2x256xf32>
    %100 = arith.addf %91, %99 : vector<2x256xf32>
    %101 = vector.broadcast %14 : f32 to vector<2x256xf32>
    %102 = arith.mulf %101, %0 : vector<2x256xf32>
    %103 = arith.addf %94, %102 : vector<2x256xf32>
    %104 = vector.broadcast %23 : f32 to vector<2x256xf32>
    %105 = arith.mulf %104, %0 : vector<2x256xf32>
    %106 = arith.addf %97, %105 : vector<2x256xf32>
    %c255_i32_14 = arith.constant 255 : i32
    %107 = tpu.dynamic_rotate %0 by %c255_i32_14 dim 1 : vector<2x256xf32>, i32 -> vector<2x256xf32>
    %cst_15 = arith.constant 0.000000e+00 : f32
    %108 = vector.broadcast %cst_15 : f32 to vector<2x256xf32>
    %109 = arith.select %39, %107, %108 : vector<2x256xi1>, vector<2x256xf32>
    %110 = vector.broadcast %6 : f32 to vector<2x256xf32>
    %111 = arith.mulf %110, %109 : vector<2x256xf32>
    %112 = arith.addf %100, %111 : vector<2x256xf32>
    %113 = vector.broadcast %15 : f32 to vector<2x256xf32>
    %114 = arith.mulf %113, %109 : vector<2x256xf32>
    %115 = arith.addf %103, %114 : vector<2x256xf32>
    %116 = vector.broadcast %24 : f32 to vector<2x256xf32>
    %117 = arith.mulf %116, %109 : vector<2x256xf32>
    %118 = arith.addf %106, %117 : vector<2x256xf32>
    %c1_i32_16 = arith.constant 1 : i32
    %119 = tpu.dynamic_rotate %49 by %c1_i32_16 dim 1 : vector<2x256xf32>, i32 -> vector<2x256xf32>
    %cst_17 = arith.constant 0.000000e+00 : f32
    %120 = vector.broadcast %cst_17 : f32 to vector<2x256xf32>
    %121 = arith.select %37, %119, %120 : vector<2x256xi1>, vector<2x256xf32>
    %122 = vector.broadcast %7 : f32 to vector<2x256xf32>
    %123 = arith.mulf %122, %121 : vector<2x256xf32>
    %124 = arith.addf %112, %123 : vector<2x256xf32>
    %125 = vector.broadcast %16 : f32 to vector<2x256xf32>
    %126 = arith.mulf %125, %121 : vector<2x256xf32>
    %127 = arith.addf %115, %126 : vector<2x256xf32>
    %128 = vector.broadcast %25 : f32 to vector<2x256xf32>
    %129 = arith.mulf %128, %121 : vector<2x256xf32>
    %130 = arith.addf %118, %129 : vector<2x256xf32>
    %131 = vector.broadcast %8 : f32 to vector<2x256xf32>
    %132 = arith.mulf %131, %49 : vector<2x256xf32>
    %133 = arith.addf %124, %132 : vector<2x256xf32>
    %134 = vector.broadcast %17 : f32 to vector<2x256xf32>
    %135 = arith.mulf %134, %49 : vector<2x256xf32>
    %136 = arith.addf %127, %135 : vector<2x256xf32>
    %137 = vector.broadcast %26 : f32 to vector<2x256xf32>
    %138 = arith.mulf %137, %49 : vector<2x256xf32>
    %139 = arith.addf %130, %138 : vector<2x256xf32>
    %c255_i32_18 = arith.constant 255 : i32
    %140 = tpu.dynamic_rotate %49 by %c255_i32_18 dim 1 : vector<2x256xf32>, i32 -> vector<2x256xf32>
    %cst_19 = arith.constant 0.000000e+00 : f32
    %141 = vector.broadcast %cst_19 : f32 to vector<2x256xf32>
    %142 = arith.select %39, %140, %141 : vector<2x256xi1>, vector<2x256xf32>
    %143 = vector.broadcast %9 : f32 to vector<2x256xf32>
    %144 = arith.mulf %143, %142 : vector<2x256xf32>
    %145 = arith.addf %133, %144 : vector<2x256xf32>
    %146 = vector.broadcast %18 : f32 to vector<2x256xf32>
    %147 = arith.mulf %146, %142 : vector<2x256xf32>
    %148 = arith.addf %136, %147 : vector<2x256xf32>
    %149 = vector.broadcast %27 : f32 to vector<2x256xf32>
    %150 = arith.mulf %149, %142 : vector<2x256xf32>
    %151 = arith.addf %139, %150 : vector<2x256xf32>
    %c0_20 = arith.constant 0 : index
    %c0_21 = arith.constant 0 : index
    %152 = vector.load %arg4[%c0_20, %c0_21] : memref<2x768xf32, #tpu.memory_space<vmem>>, vector<2x256xf32>
    tpu.vector_store %arg4[%c0_20, %c0_21], %145 {strides = array<i32>} : memref<2x768xf32, #tpu.memory_space<vmem>>, vector<2x256xf32>,
    %c0_22 = arith.constant 0 : index
    %c256 = arith.constant 256 : index
    %153 = vector.load %arg4[%c0_22, %c256] : memref<2x768xf32, #tpu.memory_space<vmem>>, vector<2x256xf32>
    tpu.vector_store %arg4[%c0_22, %c256], %148 {strides = array<i32>} : memref<2x768xf32, #tpu.memory_space<vmem>>, vector<2x256xf32>,
    %c0_23 = arith.constant 0 : index
    %c512 = arith.constant 512 : index
    %154 = vector.load %arg4[%c0_23, %c512] : memref<2x768xf32, #tpu.memory_space<vmem>>, vector<2x256xf32>
    tpu.vector_store %arg4[%c0_23, %c512], %151 {strides = array<i32>} : memref<2x768xf32, #tpu.memory_space<vmem>>, vector<2x256xf32>,
    return
  }
  func.func @transform_0(%arg0: i32) -> i32 {
    %c0_i32 = arith.constant 0 : i32
    %c0_i32_0 = arith.constant 0 : i32
    return %c0_i32 : i32
  }
  func.func @transform_1(%arg0: i32) -> i32 {
    %c0_i32 = arith.constant 0 : i32
    %c0_i32_0 = arith.constant 0 : i32
    return %c0_i32 : i32
  }
  func.func @transform_2(%arg0: i32) -> (i32, i32) {
    %c0_i32 = arith.constant 0 : i32
    %c0_i32_0 = arith.constant 0 : i32
    return %arg0, %c0_i32 : i32, i32
  }
  func.func @transform_3(%arg0: i32) -> (i32, i32) {
    %c0_i32 = arith.constant 0 : i32
    %c0_i32_0 = arith.constant 0 : i32
    return %arg0, %c0_i32 : i32, i32
  }
}

</mosaic_0001>

<bundles_post_ra>
// kernel: tpu_custom_call.1
= control target key start
LH: loop header
LB: loop body
LE: loop exit
PB: predicated region body
PF: predicated region fallthrough
CT: control target
= control target key end

     0   :  { %8 = vsyncpa [#allocation5], 0  ;;  %s899_s0 = inlined_call_operand.hbm [shape: f32[27], index: 0, kind: input, shape index: {}]   ;;  %s900_s1 = inlined_call_operand.vmem [shape: f32[3], index: 1, kind: input, shape index: {}]   ;;  %s901_s2 = inlined_call_operand.hbm [shape: f32[2,256], index: 2, kind: input, shape index: {}]   ;;  %s902_s3 = inlined_call_operand.hbm [shape: f32[2,768], index: 3, kind: output, shape index: {}]  }
   0x1   :  { %9 = vsyncpa [#allocation6], 0 }
   0x2   :  { %10 = vsyncpa [#allocation3], 0 }
   0x3   :  { %11 = vsyncpa [#allocation4], 0  ;;  %s26_s14 = sshll.u32 %s900_s1, 4  ;;  %s504_s15 = smov [#allocation2]   ;;  %s27_s14 = int_to_ptr.vmem [resolvable:$true] %s26_s14 }
   0x4   :  { %19 = dma.hbm_to_smem %s899_s0, 16, %s504_s15, [#allocation5]  }
   0x5   :  { %s444_s18 = scalar_lea.vmem %s27_s14, 16  ;;  %p449_p1 = scmp.lt.s32.totalorder %s27_s14, %s27_s14 }
   0x6   :  { %p445_p0 = scmp.ne.s32.totalorder %s27_s14, %s444_s18  ;;  %p450_p2 = scmp.lt.s32.totalorder %s444_s18, %s444_s18 }
   0x8   :  { %p451_p3 = por %p450_p2, %p449_p1 }
   0xa   :  { %p452_p4 = pnand %p451_p3, %p445_p0 }
   0xc   :  { %455 = shalt.err (!%p452_p4)
}
   0xd   :  { %s505_s19 = smov [#allocation7]   ;;  %s506_s20 = smov [#allocation8]  }
   0xe   :  { %29 = dma.vmem_to_smem %s27_s14, 16, %s505_s19, [#allocation6]  }
   0xf   :  { %s36_s21 = sshll.u32 %s506_s20, 4  ;;  %s37_s21 = int_to_ptr.vmem [resolvable:$true] %s36_s21 }
  0x10   :  { %s464_s22 = scalar_lea.vmem %s37_s21, 64  ;;  %p469_p6 = scmp.lt.s32.totalorder %s37_s21, %s37_s21 }
  0x11   :  { %p465_p5 = scmp.ne.s32.totalorder %s37_s21, %s464_s22  ;;  %p470_p7 = scmp.lt.s32.totalorder %s464_s22, %s464_s22 }
  0x13   :  { %p471_p8 = por %p470_p7, %p469_p6 }
  0x15   :  { %p472_p9 = pnand %p471_p8, %p465_p5 }
  0x17   :  { %475 = shalt.err (!%p472_p9)
}
  0x18   :  { %39 = dma.hbm_to_vmem [thread:$0]  %s901_s2, 64, %s37_s21, [#allocation3]  }
  0x19   :  { %496 = dma.done.wait [#allocation5], 16  }
  0x1a   :  { %497 = vsyncadd [#allocation5], 4294967280 }
  0x1b   :  { %498 = dma.done.wait [#allocation6], 16  }
  0x1c   :  { %499 = vsyncadd [#allocation6], 4294967280 }
  0x1d   :  { %500 = dma.done.wait [#allocation3], 64  }
  0x1e   :  { %501 = vsyncadd [#allocation3], 4294967232 }
  0x1f   :  { %49 = sfence }
  0x20   :  { %v81_v0 = vlaneseq  ;;  %v507_v1 = vmov 1983009808   ;;  %v542_v5 = vld [vmem:[#allocation8] sm:$0xf]  ;;  %s508_s2 = smov 16   ;;  %s509_s23 = smov 112  }
  0x21   :  { %v94_v2 = vunpack.c.l.s4 %v507_v1  ;;  %s510_s24 = smov 1   ;;  %s511_s25 = smov 127  }
  0x22   :  { %v97_v3 = vshrl.u32 %v81_v0, 7  ;;  %v550_v9 = vand.u32 127, %v81_v0  ;;  %s579_s26 = sld [smem:[#allocation2 + $0x1]] }
  0x23   :  { %v95_v4 = vunpack.c.0.s8 %v94_v2  ;;  %s581_s27 = sld [smem:[#allocation2 + $0xa]] }
  0x24   :  { %v553_v10 = vadd.s32 128, %v550_v9  ;;  %v84_v11 = vshra.s32 %v550_v9, 4  ;;  %vm107_vm0 = vcmp.lt.s32.totalorder %v550_v9, 16  ;;  %vm118_vm3 = vcmp.lt.s32.totalorder %v550_v9, 112  ;;  %s583_s28 = sld [smem:[#allocation2 + $0x13]] }
  0x25   :  { %v544_v6 = vsub.s32 %v95_v4, %v97_v3  ;;  %s585_s29 = sld [smem:[#allocation2 + $0x7]]  ;;  %v86_v25 = vand.u32 15, %v550_v9  ;;  %vm132_vm8 = vcmp.lt.s32.totalorder %v550_v9, 1  ;;  %vm171_vm9 = vcmp.lt.s32.totalorder %v550_v9, 127 }
  0x26   :  { %v85_v12 = vshra.s32 %v553_v10, 4  ;;  %vm110_vm1 = vcmp.ge.s32.totalorder %v84_v11, 1  ;;  %vm121_vm4 = vcmp.lt.s32.totalorder %v84_v11, 15  ;;  %s587_s30 = sld [smem:[#allocation2 + $0x10]]  ;;  %v87_v26 = vand.u32 15, %v553_v10 }
  0x27   :  { %v99_v7 = vrot.slane %v542_v5, %v544_v6  ;;  %s589_s4 = sld [smem:[#allocation2 + $0x19]]  ;;  %vm629_vm6 = vcmp.ge.s32.totalorder %v86_v25, 1  ;;  %vm723_vm10 = vcmp.lt.s32.totalorder %v86_v25, 15 }
  0x28   :  { %vm111_vm2 = vcmp.ge.s32.totalorder %v85_v12, 1  ;;  %vm122_vm5 = vcmp.lt.s32.totalorder %v85_v12, 15  ;;  %s591_s5 = sld [smem:[#allocation2 + $0x3]]  ;;  %v152_v27 = vstv %s579_s26  ;;  %vm633_vm7 = vcmp.ge.s32.totalorder %v87_v26, 1  ;;  %s512_s26 = smov [#allocation9]  }
  0x29   :  { %103 = vrot.lane.b32.xlu0 %v99_v7, %s508_s2  ;;  %v100_v8 = vcombine.high %v99_v7, %v99_v7  ;;  %114 = vrot.lane.b32.xlu1 %v99_v7, %s509_s23  ;;  %s593_s6 = sld [smem:[#allocation2 + $0xc]]  ;;  %v157_v28 = vstv %s581_s27  ;;  %vm727_vm11 = vcmp.lt.s32.totalorder %v87_v26, 15  ;;  %s385_s27 = sshll.u32 %s512_s26, 4  ;;  %s386_s27 = int_to_ptr.vmem [resolvable:$true] %s385_s27 }
  0x2a   :  { %s595_s7 = sld [smem:[#allocation2 + $0x15]]  ;;  %v162_v29 = vstv %s583_s28  ;;  %s476_s28 = scalar_lea.vmem %s386_s27, 192 }
  0x2b   :  { %s597_s8 = sld [smem:[#allocation2]]  ;;  %v305_v30 = vstv %s585_s29  ;;  %p477_p10 = scmp.ne.s32.totalorder %s386_s27, %s476_s28 }
  0x2c   :  { %s599_s9 = sld [smem:[#allocation2 + $0x9]]  ;;  %v310_v31 = vstv %s587_s30  ;;  %p481_p11 = scmp.lt.s32.totalorder %s386_s27, %s386_s27 }
  0x2d   :  { %105 = vrot.lane.b32.xlu0 %v100_v8, %s508_s2  ;;  %116 = vrot.lane.b32.xlu1 %v100_v8, %s509_s23  ;;  %s601_s10 = sld [smem:[#allocation2 + $0x12]]  ;;  %v315_v32 = vstv %s589_s4  ;;  %p482_p12 = scmp.lt.s32.totalorder %s476_s28, %s476_s28 }
  0x2e   :  { %s603_s11 = sld [smem:[#allocation7]]  ;;  %v199_v36 = vstv %s591_s5 }
  0x2f   :  { %s605_s12 = sld [smem:[#allocation7 + $0x1]]  ;;  %v204_v38 = vstv %s593_s6  ;;  %p483_p13 = por %p482_p12, %p481_p11 }
  0x30   :  { %s607_s13 = sld [smem:[#allocation7 + $0x2]]  ;;  %v209_v39 = vstv %s595_s7 }
  0x31   :  { %193 = vrot.lane.b32.xlu1 %v100_v8, %s510_s24  ;;  %191 = vrot.lane.b32.xlu0 %v99_v7, %s510_s24  ;;  %s609_s14 = sld [smem:[#allocation2 + $0x4]]  ;;  %v137_v43 = vstv %s597_s8  ;;  %p484_p0 = pnand %p483_p13, %p477_p10 }
  0x32   :  { %s611_s15 = sld [smem:[#allocation2 + $0xd]]  ;;  %v142_v44 = vstv %s599_s9 }
  0x33   :  { %s613_s16 = sld [smem:[#allocation2 + $0x2]]  ;;  %v147_v45 = vstv %s601_s10 }
  0x34   :  { %s615_s17 = sld [smem:[#allocation2 + $0x16]]  ;;  %v125_v42 = vstv %s603_s11 }
  0x35   :  { %s619_s18 = sld [smem:[#allocation2 + $0xb]]  ;;  %v126_v47 = vstv %s605_s12 }
  0x36   :  { %s621_s19 = sld [smem:[#allocation2 + $0x14]]  ;;  %v127_v48 = vstv %s607_s13 }
  0x37   :  { %s639_s20 = sld [smem:[#allocation2 + $0x5]]  ;;  %v214_v40 = vstv %s609_s14 }
  0x38   :  { %s643_s21 = sld [smem:[#allocation2 + $0xe]]  ;;  %v229_v41 = vstv %s611_s15  ;;  %v215_v52 = vmul.f32 %v214_v40, %v542_v5 }
  0x39   :  { %s651_s22 = sld [smem:[#allocation2 + $0x17]]  ;;  %v176_v51 = vstv %s613_s16  ;;  %v230_v53 = vmul.f32 %v229_v41, %v542_v5 }
  0x3a   :  { %v244_v49 = vstv %s615_s17  ;;  %s658_s0 = sld [smem:[#allocation2 + $0x6]]  ;;  %v705_v4 = vrot.slane %v215_v52, %v544_v6 }
  0x3b   :  { %s665_s1 = sld [smem:[#allocation2 + $0xf]]  ;;  %v181_v56 = vstv %s619_s18  ;;  %v245_v61 = vmul.f32 %v244_v49, %v542_v5  ;;  %v708_v5 = vrot.slane %v230_v53, %v544_v6 }
  0x3c   :  { %v186_v57 = vstv %s621_s19  ;;  %s675_s2 = sld [smem:[#allocation2 + $0x18]] }
  0x3d   :  { %s686_s23 = sld [smem:[#allocation2 + $0x8]] }
  0x3f   :  { %v277_v25 = vstv %s651_s22 }
  0x40   :  { %v290_v26 = vstv %s658_s0 }
  0x9b   :  { %v104_v13 = vpop.permute.xlu0 %103  ;;  %v115_v19 = vpop.permute.xlu1 %114 }
  0x9f   :  { %v106_v14 = vpop.permute.xlu0 %105  ;;  %v117_v20 = vpop.permute.xlu1 %116 }
  0xa0   :  { %v108_v15 = vsel %vm107_vm0, %v104_v13, %v106_v14  ;;  %v109_v16 = vsel %vm107_vm0, %v106_v14, %v104_v13  ;;  %v119_v21 = vsel %vm118_vm3, %v115_v19, %v117_v20  ;;  %v120_v22 = vsel %vm118_vm3, %v117_v20, %v115_v19 }
  0xa1   :  { %v558_v17 = vsel %vm110_vm1, %v109_v16, 0.0  ;;  %v560_v18 = vsel %vm111_vm2, %v108_v15, 0.0  ;;  %v569_v23 = vsel %vm121_vm4, %v119_v21, 0.0  ;;  %v571_v24 = vsel %vm122_vm5, %v120_v22, 0.0 }
  0xa2   :  { %128 = vrot.lane.b32.xlu0 %v558_v17, %s510_s24  ;;  %130 = vrot.lane.b32.xlu1 %v560_v18, %s510_s24  ;;  %v668_v54 = vmul.f32 %v152_v27, %v558_v17  ;;  %v671_v55 = vmul.f32 %v152_v27, %v560_v18  ;;  %v678_v58 = vmul.f32 %v157_v28, %v558_v17  ;;  %v267_v21 = vstv %s639_s20 }
  0xa3   :  { %v194_v33 = vpop.permute.xlu1 %193  ;;  %v192_v37 = vpop.permute.xlu0 %191  ;;  %v681_v59 = vmul.f32 %v157_v28, %v560_v18  ;;  %v163_v62 = vmul.f32 %v162_v29, %v558_v17  ;;  %v164_v63 = vmul.f32 %v162_v29, %v560_v18  ;;  %v691_v0 = vmul.f32 %v305_v30, %v569_v23 }
  0xa4   :  { %v196_v46 = vsel %vm132_vm8, %v194_v33, %v192_v37  ;;  %v195_v50 = vsel %vm132_vm8, %v192_v37, %v194_v33  ;;  %v699_v2 = vmul.f32 %v305_v30, %v571_v24  ;;  %v702_v3 = vmul.f32 %v310_v31, %v569_v23 }
  0xa5   :  { %v197_v60 = vsel %vm629_vm6, %v196_v46, 0.0  ;;  %v198_v1 = vsel %vm633_vm7, %v195_v50, 0.0  ;;  %v719_v10 = vmul.f32 %v315_v32, %v571_v24  ;;  %v272_v22 = vstv %s643_s21 }
  0xa6   :  { %167 = vrot.lane.b32.xlu0 %v558_v17, %s511_s25  ;;  %169 = vrot.lane.b32.xlu1 %v560_v18, %s511_s25  ;;  %v721_v11 = vmul.f32 %v199_v36, %v197_v60  ;;  %v731_v14 = vmul.f32 %v199_v36, %v198_v1  ;;  %v733_v15 = vmul.f32 %v204_v38, %v197_v60  ;;  %v295_v29 = vstv %s665_s1 }
  0xa7   :  { %v735_v16 = vmul.f32 %v204_v38, %v198_v1  ;;  %v738_v17 = vrot.slane %v245_v61, %v544_v6  ;;  %v740_v18 = vmul.f32 %v209_v39, %v197_v60  ;;  %v742_v19 = vmul.f32 %v209_v39, %v198_v1 }
  0xa8   :  { %v239_v6 = vcombine.high %v708_v5, %v708_v5  ;;  %v300_v30 = vstv %s675_s2  ;;  %v328_v36 = vstv %s686_s23 }
  0xa9   :  { %v254_v33 = vcombine.high %v738_v17, %v738_v17 }
  0xaa   :  { %259 = vrot.lane.b32.xlu0 %v99_v7, %s511_s25  ;;  %261 = vrot.lane.b32.xlu1 %v100_v8, %s511_s25  ;;  %v713_v7 = vmul.f32 %v310_v31, %v571_v24  ;;  %v716_v8 = vmul.f32 %v315_v32, %v569_v23 }
  0xae   :  { %282 = vrot.lane.b32.xlu0 %v569_v23, %s510_s24  ;;  %284 = vrot.lane.b32.xlu1 %v571_v24, %s510_s24  ;;  %s696_s24 = sld [smem:[#allocation2 + $0x11]] }
  0xb2   :  { %320 = vrot.lane.b32.xlu0 %v569_v23, %s511_s25  ;;  %322 = vrot.lane.b32.xlu1 %v571_v24, %s511_s25  ;;  %s710_s25 = sld [smem:[#allocation2 + $0x1a]]  ;;  %v224_v24 = vcombine.high %v705_v4, %v705_v4 }
  0xb4   :  { %v333_v52 = vstv %s696_s24 }
  0xb8   :  { %v338_v53 = vstv %s710_s25 }
 0x114   :  { %v129_v20 = vpop.permute.xlu0 %128  ;;  %v131_v23 = vpop.permute.xlu1 %130 }
 0x115   :  { %v133_v27 = vsel %vm132_vm8, %v129_v20, %v131_v23  ;;  %v134_v28 = vsel %vm132_vm8, %v131_v23, %v129_v20 }
 0x116   :  { %v135_v31 = vsel %vm629_vm6, %v134_v28, 0.0  ;;  %v136_v32 = vsel %vm633_vm7, %v133_v27, 0.0 }
 0x117   :  { %v138_v37 = vmul.f32 %v137_v43, %v135_v31  ;;  %v139_v38 = vmul.f32 %v137_v43, %v136_v32  ;;  %v143_v39 = vmul.f32 %v142_v44, %v135_v31  ;;  %v144_v40 = vmul.f32 %v142_v44, %v136_v32 }
 0x118   :  { %v168_v41 = vpop.permute.xlu0 %167  ;;  %v148_v46 = vmul.f32 %v147_v45, %v135_v31  ;;  %v149_v49 = vmul.f32 %v147_v45, %v136_v32  ;;  %v170_v50 = vpop.permute.xlu1 %169 }
 0x119   :  { %v140_v60 = vadd.f32 %v138_v37, %v125_v42  ;;  %v141_v61 = vadd.f32 %v139_v38, %v125_v42  ;;  %v145_v1 = vadd.f32 %v143_v39, %v126_v47  ;;  %v146_v43 = vadd.f32 %v144_v40, %v126_v47 }
 0x11a   :  { %v150_v44 = vadd.f32 %v148_v46, %v127_v48  ;;  %v151_v20 = vadd.f32 %v149_v49, %v127_v48  ;;  %v172_v45 = vsel %vm171_vm9, %v168_v41, %v170_v50  ;;  %v173_v23 = vsel %vm171_vm9, %v170_v50, %v168_v41 }
 0x11b   :  { %v155_v42 = vadd.f32 %v668_v54, %v140_v60  ;;  %v156_v27 = vadd.f32 %v671_v55, %v141_v61  ;;  %v160_v47 = vadd.f32 %v678_v58, %v145_v1  ;;  %v161_v28 = vadd.f32 %v681_v59, %v146_v43 }
 0x11c   :  { %v260_v31 = vpop.permute.xlu0 %259  ;;  %v165_v32 = vadd.f32 %v163_v62, %v150_v44  ;;  %v166_v48 = vadd.f32 %v164_v63, %v151_v20  ;;  %v174_v37 = vsel %vm723_vm10, %v172_v45, 0.0  ;;  %v175_v38 = vsel %vm727_vm11, %v173_v23, 0.0  ;;  %v262_v39 = vpop.permute.xlu1 %261 }
 0x11d   :  { %v177_v40 = vmul.f32 %v176_v51, %v174_v37  ;;  %v178_v54 = vmul.f32 %v176_v51, %v175_v38  ;;  %v182_v55 = vmul.f32 %v181_v56, %v174_v37  ;;  %v183_v58 = vmul.f32 %v181_v56, %v175_v38 }
 0x11e   :  { %v187_v59 = vmul.f32 %v186_v57, %v174_v37  ;;  %v188_v62 = vmul.f32 %v186_v57, %v175_v38  ;;  %v263_v63 = vsel %vm171_vm9, %v260_v31, %v262_v39  ;;  %v264_v41 = vsel %vm171_vm9, %v262_v39, %v260_v31 }
 0x11f   :  { %v179_v46 = vadd.f32 %v177_v40, %v155_v42  ;;  %v180_v49 = vadd.f32 %v178_v54, %v156_v27  ;;  %v184_v50 = vadd.f32 %v182_v55, %v160_v47  ;;  %v185_v51 = vadd.f32 %v183_v58, %v161_v28 }
 0x120   :  { %v189_v60 = vadd.f32 %v187_v59, %v165_v32  ;;  %v190_v61 = vadd.f32 %v188_v62, %v166_v48  ;;  %v265_v56 = vsel %vm723_vm10, %v263_v63, 0.0  ;;  %v266_v57 = vsel %vm727_vm11, %v264_v41, 0.0  ;;  %v285_v1 = vpop.permute.xlu1 %284  ;;  %v283_v43 = vpop.permute.xlu0 %282 }
 0x121   :  { %v202_v44 = vadd.f32 %v721_v11, %v179_v46  ;;  %v203_v20 = vadd.f32 %v731_v14, %v180_v49  ;;  %v207_v45 = vadd.f32 %v733_v15, %v184_v50  ;;  %v208_v23 = vadd.f32 %v735_v16, %v185_v51 }
 0x122   :  { %v212_v42 = vadd.f32 %v740_v18, %v189_v60  ;;  %v213_v27 = vadd.f32 %v742_v19, %v190_v61  ;;  %v268_v47 = vmul.f32 %v267_v21, %v265_v56  ;;  %v269_v28 = vmul.f32 %v267_v21, %v266_v57 }
 0x123   :  { %v227_v31 = vadd.f32 %v705_v4, %v202_v44  ;;  %v228_v11 = vadd.f32 %v224_v24, %v203_v20  ;;  %v242_v14 = vadd.f32 %v708_v5, %v207_v45  ;;  %v243_v15 = vadd.f32 %v239_v6, %v208_v23 }
 0x124   :  { %v257_v16 = vadd.f32 %v738_v17, %v212_v42  ;;  %v258_v18 = vadd.f32 %v254_v33, %v213_v27  ;;  %v273_v19 = vmul.f32 %v272_v22, %v265_v56  ;;  %v274_v21 = vmul.f32 %v272_v22, %v266_v57  ;;  %v323_v22 = vpop.permute.xlu1 %322  ;;  %v321_v37 = vpop.permute.xlu0 %320 }
 0x125   :  { %v270_v32 = vadd.f32 %v268_v47, %v227_v31  ;;  %v271_v48 = vadd.f32 %v269_v28, %v228_v11  ;;  %v278_v4 = vmul.f32 %v277_v25, %v265_v56  ;;  %v279_v24 = vmul.f32 %v277_v25, %v266_v57 }
 0x126   :  { %v275_v5 = vadd.f32 %v273_v19, %v242_v14  ;;  %v276_v6 = vadd.f32 %v274_v21, %v243_v15  ;;  %v286_v17 = vsel %vm132_vm8, %v283_v43, %v285_v1  ;;  %v287_v33 = vsel %vm132_vm8, %v285_v1, %v283_v43 }
 0x127   :  { %v280_v38 = vadd.f32 %v278_v4, %v257_v16  ;;  %v281_v39 = vadd.f32 %v279_v24, %v258_v18  ;;  %v288_v40 = vsel %vm629_vm6, %v287_v33, 0.0  ;;  %v289_v54 = vsel %vm633_vm7, %v286_v17, 0.0 }
 0x128   :  { %v291_v25 = vmul.f32 %v290_v26, %v288_v40  ;;  %v292_v55 = vmul.f32 %v290_v26, %v289_v54  ;;  %v296_v58 = vmul.f32 %v295_v29, %v288_v40  ;;  %v297_v59 = vmul.f32 %v295_v29, %v289_v54 }
 0x129   :  { %v301_v62 = vmul.f32 %v300_v30, %v288_v40  ;;  %v302_v34 = vmul.f32 %v300_v30, %v289_v54  ;;  %v324_v35 = vsel %vm171_vm9, %v321_v37, %v323_v22  ;;  %v325_v63 = vsel %vm171_vm9, %v323_v22, %v321_v37 }
 0x12a   :  { %v293_v26 = vadd.f32 %v291_v25, %v270_v32  ;;  %v294_v41 = vadd.f32 %v292_v55, %v271_v48  ;;  %v298_v46 = vadd.f32 %v296_v58, %v275_v5  ;;  %v299_v49 = vadd.f32 %v297_v59, %v276_v6 }
 0x12b   :  { %v303_v50 = vadd.f32 %v301_v62, %v280_v38  ;;  %v304_v51 = vadd.f32 %v302_v34, %v281_v39  ;;  %v326_v29 = vsel %vm723_vm10, %v324_v35, 0.0  ;;  %v327_v60 = vsel %vm727_vm11, %v325_v63, 0.0 }
 0x12c   :  { %v329_v30 = vmul.f32 %v328_v36, %v326_v29  ;;  %v330_v61 = vmul.f32 %v328_v36, %v327_v60  ;;  %v334_v56 = vmul.f32 %v333_v52, %v326_v29  ;;  %v335_v9 = vmul.f32 %v333_v52, %v327_v60 }
 0x12d   :  { %v339_v57 = vmul.f32 %v338_v53, %v326_v29  ;;  %v340_v1 = vmul.f32 %v338_v53, %v327_v60  ;;  %v308_v43 = vadd.f32 %v691_v0, %v293_v26  ;;  %v309_v12 = vadd.f32 %v699_v2, %v294_v41 }
 0x12e   :  { %v313_v44 = vadd.f32 %v702_v3, %v298_v46  ;;  %v314_v13 = vadd.f32 %v713_v7, %v299_v49  ;;  %v318_v20 = vadd.f32 %v716_v8, %v303_v50  ;;  %v319_v36 = vadd.f32 %v719_v10, %v304_v51 }
 0x12f   :  { %v331_v45 = vadd.f32 %v329_v30, %v308_v43  ;;  %v332_v23 = vadd.f32 %v330_v61, %v309_v12 }
 0x130   :  { %v336_v52 = vadd.f32 %v334_v56, %v313_v44  ;;  %v337_v42 = vadd.f32 %v335_v9, %v314_v13  ;;  %v341_v27 = vadd.f32 %v339_v57, %v318_v20  ;;  %v342_v53 = vadd.f32 %v340_v1, %v319_v36 }
 0x131   :  { %v345_v47 = vcombine.low %v331_v45, %v332_v23 }
 0x132   :  { %v357_v0 = vcombine.low %v336_v52, %v337_v42  ;;  %v369_v28 = vcombine.low %v341_v27, %v342_v53 }
 0x133   :  { %424 = vst.sshfl [vmem:[#allocation9] sm:$0x33 pattern:$0x76325410] %v345_v47 }
 0x134   :  { %425 = vst.sshfl [vmem:[#allocation9 + $0x4] sm:$0x33 pattern:$0x76325410] %v357_v0 }
 0x135   :  { %426 = vst.sshfl [vmem:[#allocation9 + $0x8] sm:$0x33 pattern:$0x76325410] %v369_v28 }
 0x136   :  { %487 = shalt.err (!%p484_p0)
}
 0x137   :  { %388 = dma.vmem_to_hbm [thread:$0]  %s386_s27, 192, %s902_s3, [#allocation4]  }
 0x138   :  { %502 = dma.done.wait [#allocation4], 192  }
 0x139   :  { %503 = vsyncadd [#allocation4], 4294967104 }
 0x13a   :  { %392 = vsyncpa [#allocation3], 1 }
 0x13b   :  { %393 = vsyncpa [#allocation4], 1 }
 0x13c   :  { %394 = vsyncpa [#allocation5], 1 }
 0x13d   :  { %395 = vsyncpa [#allocation6], 1 }

</bundles_post_ra>
